<compile_context>
chip_gen: v5e
topology: v5e:2x2
jax: 0.10.0
libtpu: 0.0.40
codegen_flags: <defaults>
</compile_context>

<pallas_src>
import jax
import jax.numpy as jnp
from jax.experimental import pallas as pl
from jax.experimental.pallas import tpu as pltpu

LAYER_NORM_EPS = 1e-12  # BERT-style config.layer_norm_eps

# Rows of the stacked [8, H] vector operand.
_ROW_BH, _ROW_BT, _ROW_B1, _ROW_G, _ROW_BETA = 0, 1, 2, 3, 4


def classifier_kernel(
    hs_ref, ts_ref,          # [TN, H] bf16   (batch tiles)
    wh_ref, wt_ref,          # [H, H]  bf16   (head / tail extractor weights)
    w1h_ref, w1t_ref,        # [H, H]  bf16   (Bilinear Linear1, split halves)
    w2_ref,                  # [H, Lp] bf16   (Bilinear Linear2, no bias, lane-padded)
    vec_ref,                 # [8, H]  f32    (bh, bt, b1, ln_gamma, ln_beta, pad)
    out_ref,                 # [TN, Lp] f32
):
    bh = vec_ref[_ROW_BH:_ROW_BH + 1, :]
    bt = vec_ref[_ROW_BT:_ROW_BT + 1, :]
    b1 = vec_ref[_ROW_B1:_ROW_B1 + 1, :]
    g = vec_ref[_ROW_G:_ROW_G + 1, :]
    beta = vec_ref[_ROW_BETA:_ROW_BETA + 1, :]

    hs = hs_ref[...]
    ts = ts_ref[...]

    # Head / Tail extractors: Linear (bf16 MXU, f32 acc) + Tanh (EUP).
    hs_pair = jnp.tanh(
        jnp.dot(hs, wh_ref[...], preferred_element_type=jnp.float32) + bh
    )
    ts_pair = jnp.tanh(
        jnp.dot(ts, wt_ref[...], preferred_element_type=jnp.float32) + bt
    )

    # Bilinear Linear1 over concat([hs_pair, ts_pair], -1), concat folded away:
    #   concat(h, t) @ W1  ==  h @ W1_head + t @ W1_tail
    x = (
        jnp.dot(hs_pair.astype(jnp.bfloat16), w1h_ref[...],
                preferred_element_type=jnp.float32)
        + jnp.dot(ts_pair.astype(jnp.bfloat16), w1t_ref[...],
                  preferred_element_type=jnp.float32)
        + b1
    )

    # ReLU
    x = jnp.maximum(x, 0.0)

    # Dropout(config.hidden_dropout_prob): identity at inference time.
    # TODO(synk): training-mode dropout (pltpu.prng_seed + prng_random_bits mask).

    # LayerNorm over the last dim — single pass E[x], E[x^2] in f32.
    mean = jnp.mean(x, axis=-1, keepdims=True)
    mean_sq = jnp.mean(x * x, axis=-1, keepdims=True)
    var = jnp.maximum(mean_sq - mean * mean, 0.0)
    inv = jax.lax.rsqrt(var + LAYER_NORM_EPS)
    y = (x - mean) * inv * g + beta

    # Final Linear (no bias) -> lane-dense [TN, Lp] f32 logits.
    out_ref[...] = jnp.dot(
        y.astype(jnp.bfloat16), w2_ref[...], preferred_element_type=jnp.float32
    )


def classifier_forward(hs, ts, params, rs=None, *, tile_n=512):
    """Pallas forward.  `rs` accepted for signature parity but unused
    (the PyTorch reference forward never touches rs or the MLP sub-module)."""
    del rs
    N, H = hs.shape
    L = params["w2"].shape[1]
    Lp = pl.cdiv(max(L, 1), 128) * 128          # lane-dense padded label dim

    # Tile over N; pad N up to a multiple of the tile so every block is full.
    tn = min(tile_n, max(8, pl.cdiv(N, 8) * 8))
    n_pad = pl.cdiv(N, tn) * tn

    bf16 = jnp.bfloat16
    hs_p = jnp.pad(hs, ((0, n_pad - N), (0, 0))).astype(bf16)
    ts_p = jnp.pad(ts, ((0, n_pad - N), (0, 0))).astype(bf16)

    wh = params["wh"].astype(bf16)
    wt = params["wt"].astype(bf16)
    w1h = params["w1h"].astype(bf16)
    w1t = params["w1t"].astype(bf16)
    w2 = jnp.pad(params["w2"], ((0, 0), (0, Lp - L))).astype(bf16)

    # Stack the small per-feature vectors into one [8, H] f32 operand.
    vecs = jnp.zeros((8, H), jnp.float32)
    vecs = vecs.at[_ROW_BH].set(params["bh"].reshape(H))
    vecs = vecs.at[_ROW_BT].set(params["bt"].reshape(H))
    vecs = vecs.at[_ROW_B1].set(params["b1"].reshape(H))
    vecs = vecs.at[_ROW_G].set(params["ln_g"].reshape(H))
    vecs = vecs.at[_ROW_BETA].set(params["ln_b"].reshape(H))

    grid = (n_pad // tn,)
    row_spec = pl.BlockSpec((tn, H), lambda i: (i, 0))
    res_hh = pl.BlockSpec((H, H), lambda i: (0, 0))        # weights stay resident

    out = pl.pallas_call(
        classifier_kernel,
        out_shape=jax.ShapeDtypeStruct((n_pad, Lp), jnp.float32),
        grid=grid,
        in_specs=[
            row_spec, row_spec,                            # hs, ts tiles
            res_hh, res_hh,                                # wh, wt
            res_hh, res_hh,                                # w1h, w1t
            pl.BlockSpec((H, Lp), lambda i: (0, 0)),       # w2 (lane-padded)
            pl.BlockSpec((8, H), lambda i: (0, 0)),        # stacked vectors
        ],
        out_specs=pl.BlockSpec((tn, Lp), lambda i: (i, 0)),
        compiler_params=pltpu.CompilerParams(
            dimension_semantics=("parallel",),             # shard grid across TCs
            vmem_limit_bytes=48 * 1024 * 1024,             # safe on v7x 64 MiB VMEM
        ),
    )(hs_p, ts_p, wh, wt, w1h, w1t, w2, vecs)

    return out[:N, :L]


def classifier_reference(hs, ts, params):
    """Pure-JAX f32 reference (mirrors the PyTorch forward)."""
    hs_pair = jnp.tanh(hs @ params["wh"] + params["bh"])
    ts_pair = jnp.tanh(ts @ params["wt"] + params["bt"])
    x = hs_pair @ params["w1h"] + ts_pair @ params["w1t"] + params["b1"]
    x = jnp.maximum(x, 0.0)
    mean = jnp.mean(x, axis=-1, keepdims=True)
    var = jnp.mean((x - mean) ** 2, axis=-1, keepdims=True)
    y = (x - mean) * jax.lax.rsqrt(var + LAYER_NORM_EPS)
    y = y * params["ln_g"] + params["ln_b"]
    return y @ params["w2"]


def init_params(key, hidden_size, num_labels):
    ks = jax.random.split(key, 6)
    H, L = hidden_size, num_labels
    s = 0.02
    return {
        "wh": s * jax.random.normal(ks[0], (H, H), jnp.float32),
        "bh": jnp.zeros((H,), jnp.float32),
        "wt": s * jax.random.normal(ks[1], (H, H), jnp.float32),
        "bt": jnp.zeros((H,), jnp.float32),
        # Bilinear Linear1 has in_features = 2H; it is stored pre-split into
        # the head half (first H input features of the concat) and tail half.
        "w1h": s * jax.random.normal(ks[2], (H, H), jnp.float32),
        "w1t": s * jax.random.normal(ks[3], (H, H), jnp.float32),
        "b1": s * jax.random.normal(ks[4], (H,), jnp.float32),
        "ln_g": jnp.ones((H,), jnp.float32),
        "ln_b": jnp.zeros((H,), jnp.float32),
        "w2": s * jax.random.normal(ks[5], (H, L), jnp.float32),
    }


if __name__ == "__main__":
    hidden_size = 128   # config.hidden_size (lane-aligned; production would be 768)
    num_labels = 8      # config.num_labels (padded to 128 lanes inside the wrapper)
    batch = 16          # number of (head, tail) pairs

    key = jax.random.PRNGKey(0)
    k_hs, k_ts, k_rs, k_p = jax.random.split(key, 4)
    hs = jax.random.normal(k_hs, (batch, hidden_size), jnp.float32)
    ts = jax.random.normal(k_ts, (batch, hidden_size), jnp.float32)
    rs = jax.random.normal(k_rs, (batch, hidden_size), jnp.float32)  # unused by forward

    params = init_params(k_p, hidden_size, num_labels)

    logits = classifier_forward(hs, ts, params, rs)
    jax.block_until_ready(logits)

    assert logits.shape == (batch, num_labels)
    assert bool(jnp.all(jnp.isfinite(logits)))

    ref = classifier_reference(hs, ts, params)
    assert bool(jnp.allclose(logits, ref, rtol=5e-2, atol=5e-2)), (
        float(jnp.max(jnp.abs(logits - ref))))

    print("KERNEL_OK")
</pallas_src>

<mosaic_0001>
module attributes {stable_mosaic.version = 11 : i64} {
  func.func @classifier_kernel(%arg0: i32, %arg1: memref<16x128xbf16, #tpu.memory_space<vmem>>, %arg2: memref<16x128xbf16, #tpu.memory_space<vmem>>, %arg3: memref<128x128xbf16, #tpu.memory_space<vmem>>, %arg4: memref<128x128xbf16, #tpu.memory_space<vmem>>, %arg5: memref<128x128xbf16, #tpu.memory_space<vmem>>, %arg6: memref<128x128xbf16, #tpu.memory_space<vmem>>, %arg7: memref<128x128xbf16, #tpu.memory_space<vmem>>, %arg8: memref<8x128xf32, #tpu.memory_space<vmem>>, %arg9: memref<16x128xf32, #tpu.memory_space<vmem>>) attributes {dimension_semantics = [#tpu.dimension_semantics<parallel>], iteration_bounds = array<i64: 1>, scalar_prefetch = 0 : i64, scratch_operands = 0 : i64, tpu.core_type = #tpu.core_type<tc>, window_params = [{transform_indices = @transform_0, window_bounds = array<i64: 16, 128>}, {transform_indices = @transform_1, window_bounds = array<i64: 16, 128>}, {pipeline_mode = #tpu.pipeline_mode<synchronous>, transform_indices = @transform_2, window_bounds = array<i64: 128, 128>}, {pipeline_mode = #tpu.pipeline_mode<synchronous>, transform_indices = @transform_3, window_bounds = array<i64: 128, 128>}, {pipeline_mode = #tpu.pipeline_mode<synchronous>, transform_indices = @transform_4, window_bounds = array<i64: 128, 128>}, {pipeline_mode = #tpu.pipeline_mode<synchronous>, transform_indices = @transform_5, window_bounds = array<i64: 128, 128>}, {pipeline_mode = #tpu.pipeline_mode<synchronous>, transform_indices = @transform_6, window_bounds = array<i64: 128, 128>}, {pipeline_mode = #tpu.pipeline_mode<synchronous>, transform_indices = @transform_7, window_bounds = array<i64: 8, 128>}, {transform_indices = @transform_8, window_bounds = array<i64: 16, 128>}]} {
    %c0 = arith.constant 0 : index
    %c0_0 = arith.constant 0 : index
    %0 = vector.load %arg8[%c0, %c0_0] : memref<8x128xf32, #tpu.memory_space<vmem>>, vector<1x128xf32>
    %c1 = arith.constant 1 : index
    %c0_1 = arith.constant 0 : index
    %1 = vector.load %arg8[%c1, %c0_1] : memref<8x128xf32, #tpu.memory_space<vmem>>, vector<1x128xf32>
    %c2 = arith.constant 2 : index
    %c0_2 = arith.constant 0 : index
    %2 = vector.load %arg8[%c2, %c0_2] : memref<8x128xf32, #tpu.memory_space<vmem>>, vector<1x128xf32>
    %c3 = arith.constant 3 : index
    %c0_3 = arith.constant 0 : index
    %3 = vector.load %arg8[%c3, %c0_3] : memref<8x128xf32, #tpu.memory_space<vmem>>, vector<1x128xf32>
    %c4 = arith.constant 4 : index
    %c0_4 = arith.constant 0 : index
    %4 = vector.load %arg8[%c4, %c0_4] : memref<8x128xf32, #tpu.memory_space<vmem>>, vector<1x128xf32>
    %c0_5 = arith.constant 0 : index
    %c0_6 = arith.constant 0 : index
    %5 = vector.load %arg1[%c0_5, %c0_6] : memref<16x128xbf16, #tpu.memory_space<vmem>>, vector<16x128xbf16>
    %c0_7 = arith.constant 0 : index
    %c0_8 = arith.constant 0 : index
    %6 = vector.load %arg2[%c0_7, %c0_8] : memref<16x128xbf16, #tpu.memory_space<vmem>>, vector<16x128xbf16>
    %c0_9 = arith.constant 0 : index
    %c0_10 = arith.constant 0 : index
    %7 = vector.load %arg3[%c0_9, %c0_10] : memref<128x128xbf16, #tpu.memory_space<vmem>>, vector<128x128xbf16>
    %cst = arith.constant dense<0.000000e+00> : vector<16x128xf32>
    %8 = tpu.matmul %5, %7, %cst {dimension_numbers = #tpu.dot_dimension_numbers<[1], [0], [0], [1], [0, 0, 1, 1], [], []>} : vector<16x128xbf16>, vector<128x128xbf16>, vector<16x128xf32> -> vector<16x128xf32>
    %9 = vector.broadcast %0 : vector<1x128xf32> to vector<16x128xf32>
    %10 = arith.addf %8, %9 : vector<16x128xf32>
    %11 = math.tanh %10 : vector<16x128xf32>
    %c0_11 = arith.constant 0 : index
    %c0_12 = arith.constant 0 : index
    %12 = vector.load %arg4[%c0_11, %c0_12] : memref<128x128xbf16, #tpu.memory_space<vmem>>, vector<128x128xbf16>
    %cst_13 = arith.constant dense<0.000000e+00> : vector<16x128xf32>
    %13 = tpu.matmul %6, %12, %cst_13 {dimension_numbers = #tpu.dot_dimension_numbers<[1], [0], [0], [1], [0, 0, 1, 1], [], []>} : vector<16x128xbf16>, vector<128x128xbf16>, vector<16x128xf32> -> vector<16x128xf32>
    %14 = vector.broadcast %1 : vector<1x128xf32> to vector<16x128xf32>
    %15 = arith.addf %13, %14 : vector<16x128xf32>
    %16 = math.tanh %15 : vector<16x128xf32>
    %17 = arith.truncf %11 : vector<16x128xf32> to vector<16x128xbf16>
    %c0_14 = arith.constant 0 : index
    %c0_15 = arith.constant 0 : index
    %18 = vector.load %arg5[%c0_14, %c0_15] : memref<128x128xbf16, #tpu.memory_space<vmem>>, vector<128x128xbf16>
    %cst_16 = arith.constant dense<0.000000e+00> : vector<16x128xf32>
    %19 = tpu.matmul %17, %18, %cst_16 {dimension_numbers = #tpu.dot_dimension_numbers<[1], [0], [0], [1], [0, 0, 1, 1], [], []>} : vector<16x128xbf16>, vector<128x128xbf16>, vector<16x128xf32> -> vector<16x128xf32>
    %20 = arith.truncf %16 : vector<16x128xf32> to vector<16x128xbf16>
    %c0_17 = arith.constant 0 : index
    %c0_18 = arith.constant 0 : index
    %21 = vector.load %arg6[%c0_17, %c0_18] : memref<128x128xbf16, #tpu.memory_space<vmem>>, vector<128x128xbf16>
    %cst_19 = arith.constant dense<0.000000e+00> : vector<16x128xf32>
    %22 = tpu.matmul %20, %21, %cst_19 {dimension_numbers = #tpu.dot_dimension_numbers<[1], [0], [0], [1], [0, 0, 1, 1], [], []>} : vector<16x128xbf16>, vector<128x128xbf16>, vector<16x128xf32> -> vector<16x128xf32>
    %23 = arith.addf %19, %22 : vector<16x128xf32>
    %24 = vector.broadcast %2 : vector<1x128xf32> to vector<16x128xf32>
    %25 = arith.addf %23, %24 : vector<16x128xf32>
    %cst_20 = arith.constant 0.000000e+00 : f32
    %26 = vector.broadcast %cst_20 : f32 to vector<16x128xf32>
    %27 = arith.maximumf %25, %26 : vector<16x128xf32>
    %cst_21 = arith.constant dense<0.000000e+00> : vector<16xf32>
    %28 = vector.multi_reduction <add>, %27, %cst_21 [1] : vector<16x128xf32> to vector<16xf32>
    %29 = vector.shape_cast %28 : vector<16xf32> to vector<16x1xf32>
    %cst_22 = arith.constant 1.280000e+02 : f32
    %30 = vector.broadcast %cst_22 : f32 to vector<16x1xf32>
    %31 = arith.divf %29, %30 : vector<16x1xf32>
    %32 = arith.mulf %27, %27 : vector<16x128xf32>
    %cst_23 = arith.constant dense<0.000000e+00> : vector<16xf32>
    %33 = vector.multi_reduction <add>, %32, %cst_23 [1] : vector<16x128xf32> to vector<16xf32>
    %34 = vector.shape_cast %33 : vector<16xf32> to vector<16x1xf32>
    %cst_24 = arith.constant 1.280000e+02 : f32
    %35 = vector.broadcast %cst_24 : f32 to vector<16x1xf32>
    %36 = arith.divf %34, %35 : vector<16x1xf32>
    %37 = arith.mulf %31, %31 : vector<16x1xf32>
    %38 = arith.subf %36, %37 : vector<16x1xf32>
    %cst_25 = arith.constant 0.000000e+00 : f32
    %39 = vector.broadcast %cst_25 : f32 to vector<16x1xf32>
    %40 = arith.maximumf %38, %39 : vector<16x1xf32>
    %cst_26 = arith.constant 9.99999996E-13 : f32
    %41 = vector.broadcast %cst_26 : f32 to vector<16x1xf32>
    %42 = arith.addf %40, %41 : vector<16x1xf32>
    %43 = math.rsqrt %42 : vector<16x1xf32>
    %44 = vector.broadcast %31 : vector<16x1xf32> to vector<16x128xf32>
    %45 = arith.subf %27, %44 : vector<16x128xf32>
    %46 = vector.broadcast %43 : vector<16x1xf32> to vector<16x128xf32>
    %47 = arith.mulf %45, %46 : vector<16x128xf32>
    %48 = vector.broadcast %3 : vector<1x128xf32> to vector<16x128xf32>
    %49 = arith.mulf %47, %48 : vector<16x128xf32>
    %50 = vector.broadcast %4 : vector<1x128xf32> to vector<16x128xf32>
    %51 = arith.addf %49, %50 : vector<16x128xf32>
    %52 = arith.truncf %51 : vector<16x128xf32> to vector<16x128xbf16>
    %c0_27 = arith.constant 0 : index
    %c0_28 = arith.constant 0 : index
    %53 = vector.load %arg7[%c0_27, %c0_28] : memref<128x128xbf16, #tpu.memory_space<vmem>>, vector<128x128xbf16>
    %cst_29 = arith.constant dense<0.000000e+00> : vector<16x128xf32>
    %54 = tpu.matmul %52, %53, %cst_29 {dimension_numbers = #tpu.dot_dimension_numbers<[1], [0], [0], [1], [0, 0, 1, 1], [], []>} : vector<16x128xbf16>, vector<128x128xbf16>, vector<16x128xf32> -> vector<16x128xf32>
    %c0_30 = arith.constant 0 : index
    %c0_31 = arith.constant 0 : index
    %55 = vector.load %arg9[%c0_30, %c0_31] : memref<16x128xf32, #tpu.memory_space<vmem>>, vector<16x128xf32>
    tpu.vector_store %arg9[%c0_30, %c0_31], %54 {strides = array<i32>} : memref<16x128xf32, #tpu.memory_space<vmem>>, vector<16x128xf32>,
    return
  }
  func.func @transform_0(%arg0: i32) -> (i32, i32) {
    %c0_i32 = arith.constant 0 : i32
    %c0_i32_0 = arith.constant 0 : i32
    return %arg0, %c0_i32 : i32, i32
  }
  func.func @transform_1(%arg0: i32) -> (i32, i32) {
    %c0_i32 = arith.constant 0 : i32
    %c0_i32_0 = arith.constant 0 : i32
    return %arg0, %c0_i32 : i32, i32
  }
  func.func @transform_2(%arg0: i32) -> (i32, i32) {
    %c0_i32 = arith.constant 0 : i32
    %c0_i32_0 = arith.constant 0 : i32
    %c0_i32_1 = arith.constant 0 : i32
    return %c0_i32, %c0_i32_0 : i32, i32
  }
  func.func @transform_3(%arg0: i32) -> (i32, i32) {
    %c0_i32 = arith.constant 0 : i32
    %c0_i32_0 = arith.constant 0 : i32
    %c0_i32_1 = arith.constant 0 : i32
    return %c0_i32, %c0_i32_0 : i32, i32
  }
  func.func @transform_4(%arg0: i32) -> (i32, i32) {
    %c0_i32 = arith.constant 0 : i32
    %c0_i32_0 = arith.constant 0 : i32
    %c0_i32_1 = arith.constant 0 : i32
    return %c0_i32, %c0_i32_0 : i32, i32
  }
  func.func @transform_5(%arg0: i32) -> (i32, i32) {
    %c0_i32 = arith.constant 0 : i32
    %c0_i32_0 = arith.constant 0 : i32
    %c0_i32_1 = arith.constant 0 : i32
    return %c0_i32, %c0_i32_0 : i32, i32
  }
  func.func @transform_6(%arg0: i32) -> (i32, i32) {
    %c0_i32 = arith.constant 0 : i32
    %c0_i32_0 = arith.constant 0 : i32
    %c0_i32_1 = arith.constant 0 : i32
    return %c0_i32, %c0_i32_0 : i32, i32
  }
  func.func @transform_7(%arg0: i32) -> (i32, i32) {
    %c0_i32 = arith.constant 0 : i32
    %c0_i32_0 = arith.constant 0 : i32
    %c0_i32_1 = arith.constant 0 : i32
    return %c0_i32, %c0_i32_0 : i32, i32
  }
  func.func @transform_8(%arg0: i32) -> (i32, i32) {
    %c0_i32 = arith.constant 0 : i32
    %c0_i32_0 = arith.constant 0 : i32
    return %arg0, %c0_i32 : i32, i32
  }
}

</mosaic_0001>

<bundles_post_ra>
// kernel: tpu_custom_call.1
= control target key start
LH: loop header
LB: loop body
LE: loop exit
PB: predicated region body
PF: predicated region fallthrough
CT: control target
= control target key end

     0   :  { %13 = vsyncpa [#allocation3], 0  ;;  %s1252_s0 = inlined_call_operand.hbm [shape: bf16[16,128], index: 0, kind: input, shape index: {}]   ;;  %s1253_s1 = inlined_call_operand.hbm [shape: bf16[16,128], index: 1, kind: input, shape index: {}]   ;;  %s1254_s2 = inlined_call_operand.hbm [shape: bf16[128,128], index: 2, kind: input, shape index: {}]   ;;  %s1255_s3 = inlined_call_operand.hbm [shape: bf16[128,128], index: 3, kind: input, shape index: {}]   ;;  %s1256_s4 = inlined_call_operand.hbm [shape: bf16[128,128], index: 4, kind: input, shape index: {}]   ;;  %s1257_s5 = inlined_call_operand.hbm [shape: bf16[128,128], index: 5, kind: input, shape index: {}]   ;;  %s1258_s6 = inlined_call_operand.hbm [shape: bf16[128,128], index: 6, kind: input, shape index: {}]   ;;  %s1259_s7 = inlined_call_operand.hbm [shape: f32[8,128], index: 7, kind: input, shape index: {}]   ;;  %s1260_s8 = inlined_call_operand.hbm [shape: f32[16,128], index: 8, kind: output, shape index: {}]  }
   0x1   :  { %14 = vsyncpa [#allocation6], 0 }
   0x2   :  { %15 = vsyncpa [#allocation9], 0 }
   0x3   :  { %16 = vsyncpa [#allocation12], 0 }
   0x4   :  { %17 = vsyncpa [#allocation15], 0 }
   0x5   :  { %18 = vsyncpa [#allocation4], 0  ;;  %s36_s29 = sshll.u32 %s1253_s1, 4  ;;  %s1133_s30 = smov [#allocation5]   ;;  %s37_s29 = int_to_ptr.hbm [resolvable:$true] %s36_s29 }
   0x6   :  { %s38_s9 = sshll.u32 %s1133_s30, 4  ;;  %s62_s12 = sshll.u32 %s1255_s3, 4  ;;  %s39_s9 = int_to_ptr.vmem [resolvable:$true] %s38_s9  ;;  %s63_s12 = int_to_ptr.hbm [resolvable:$true] %s62_s12 }
   0x7   :  { %s1134_s13 = smov 64   ;;  %s1135_s14 = smov 4  }
   0x8   :  { %44 = dma.hbm_to_vmem [thread:$0]  %s37_s29, 128, %s39_s9, [#allocation6], %s1134_s13, %s1134_s13, %s1135_s14  }
   0x9   :  { %s1136_s15 = smov [#allocation8]   ;;  %s88_s1 = sshll.u32 %s1257_s5, 4  ;;  %s89_s1 = int_to_ptr.hbm [resolvable:$true] %s88_s1 }
   0xa   :  { %s64_s16 = sshll.u32 %s1136_s15, 4  ;;  %s23_s20 = sshll.u32 %s1252_s0, 4  ;;  %s65_s16 = int_to_ptr.vmem [resolvable:$true] %s64_s16  ;;  %s24_s20 = int_to_ptr.hbm [resolvable:$true] %s23_s20 }
   0xb   :  { %70 = dma.hbm_to_vmem [thread:$0]  %s63_s12, 1024, %s65_s16, [#allocation9], %s1134_s13, %s1134_s13, %s1135_s14  }
   0xc   :  { %s1137_s21 = smov [#allocation11]   ;;  %s1138_s23 = smov [#allocation2]  }
   0xd   :  { %s90_s22 = sshll.u32 %s1137_s21, 4  ;;  %s25_s5 = sshll.u32 %s1138_s23, 4  ;;  %s91_s22 = int_to_ptr.vmem [resolvable:$true] %s90_s22  ;;  %s26_s5 = int_to_ptr.vmem [resolvable:$true] %s25_s5 }
   0xe   :  { %96 = dma.hbm_to_vmem [thread:$0]  %s89_s1, 1024, %s91_s22, [#allocation12], %s1134_s13, %s1134_s13, %s1135_s14  }
   0xf   :  { %s49_s26 = sshll.u32 %s1254_s2, 4  ;;  %s75_s28 = sshll.u32 %s1256_s4, 4  ;;  %s50_s26 = int_to_ptr.hbm [resolvable:$true] %s49_s26  ;;  %s76_s28 = int_to_ptr.hbm [resolvable:$true] %s75_s28 }
  0x10   :  { %31 = dma.hbm_to_vmem [thread:$0]  %s24_s20, 128, %s26_s5, [#allocation3], %s1134_s13, %s1134_s13, %s1135_s14  }
  0x11   :  { %s1139_s29 = smov [#allocation7]   ;;  %s1140_s9 = smov [#allocation10]  }
  0x12   :  { %s51_s30 = sshll.u32 %s1139_s29, 4  ;;  %s77_s2 = sshll.u32 %s1140_s9, 4  ;;  %s52_s30 = int_to_ptr.vmem [resolvable:$true] %s51_s30  ;;  %s78_s2 = int_to_ptr.vmem [resolvable:$true] %s77_s2 }
  0x13   :  { %57 = dma.hbm_to_vmem [thread:$0]  %s50_s26, 1024, %s52_s30, [#allocation6], %s1134_s13, %s1134_s13, %s1135_s14  }
  0x14   :  { %s101_s12 = sshll.u32 %s1258_s6, 4  ;;  %s115_s16 = sshll.u32 %s1259_s7, 4  ;;  %s102_s12 = int_to_ptr.hbm [resolvable:$true] %s101_s12  ;;  %s116_s16 = int_to_ptr.hbm [resolvable:$true] %s115_s16 }
  0x15   :  { %83 = dma.hbm_to_vmem [thread:$0]  %s76_s28, 1024, %s78_s2, [#allocation9], %s1134_s13, %s1134_s13, %s1135_s14  }
  0x16   :  { %s1141_s17 = smov [#allocation13]   ;;  %s1142_s1 = smov [#allocation14]  }
  0x17   :  { %s103_s18 = sshll.u32 %s1141_s17, 4  ;;  %s117_s6 = sshll.u32 %s1142_s1, 4  ;;  %s104_s18 = int_to_ptr.vmem [resolvable:$true] %s103_s18  ;;  %s118_s6 = int_to_ptr.vmem [resolvable:$true] %s117_s6 }
  0x18   :  { %109 = dma.hbm_to_vmem [thread:$0]  %s102_s12, 1024, %s104_s18, [#allocation12], %s1134_s13, %s1134_s13, %s1135_s14  }
  0x19   :  { %120 = dma.hbm_to_vmem [thread:$0]  %s116_s16, 128, %s118_s6, [#allocation15]  }
  0x1a   :  { %1121 = dma.done.wait [#allocation3], 128  }
  0x1b   :  { %1122 = vsyncadd [#allocation3], 4294967168 }
  0x1c   :  { %1123 = dma.done.wait [#allocation6], 1152  }
  0x1d   :  { %1124 = vsyncadd [#allocation6], 4294966144 }
  0x1e   :  { %1125 = dma.done.wait [#allocation9], 2048  }
  0x1f   :  { %1126 = vsyncadd [#allocation9], 4294965248 }
  0x20   :  { %1127 = dma.done.wait [#allocation12], 2048  }
  0x21   :  { %1128 = vsyncadd [#allocation12], 4294965248 }
  0x22   :  { %1129 = dma.done.wait [#allocation15], 128  }
  0x23   :  { %1130 = vsyncadd [#allocation15], 4294967168  ;;  %v839_v0 = vld [vmem:[#allocation7 + $0x38] sm:$0xff]  ;;  %v838_v2 = vld [vmem:[#allocation7 + $0x30] sm:$0xff]  ;;  %v1143_v63 = vmov 128.0   ;;  %s1144_s7 = smov [#allocation16]  }
  0x24   :  { %v847_v1 = vld [vmem:[#allocation8 + $0x38] sm:$0xff]  ;;  %233 = vmatpush.bf16.msra.mxu0 %v839_v0  ;;  %v846_v3 = vld [vmem:[#allocation8 + $0x30] sm:$0xff]  ;;  %v837_v4 = vld [vmem:[#allocation7 + $0x28] sm:$0xff]  ;;  %s643_s13 = sshll.u32 %s1144_s7, 4  ;;  %s645_s19 = sshll.u32 %s1260_s8, 4  ;;  %s644_s13 = int_to_ptr.vmem [resolvable:$true] %s643_s13  ;;  %s646_s19 = int_to_ptr.hbm [resolvable:$true] %s645_s19 }
  0x25   :  { %320 = vmatpush.bf16.msra.mxu1 %v847_v1  ;;  %v845_v5 = vld [vmem:[#allocation8 + $0x28] sm:$0xff]  ;;  %v863_v6 = vld [vmem:[#allocation11 + $0x38] sm:$0xff]  ;;  %v862_v8 = vld [vmem:[#allocation11 + $0x30] sm:$0xff]  ;;  %s1145_s20 = smov 128   ;;  %s1146_s21 = smov 8  }
  0x26   :  { %v855_v7 = vld [vmem:[#allocation10 + $0x38] sm:$0xff]  ;;  %418 = vmatpush.bf16.msra.mxu2 %v863_v6  ;;  %v854_v9 = vld [vmem:[#allocation10 + $0x30] sm:$0xff]  ;;  %v836_v10 = vld [vmem:[#allocation7 + $0x20] sm:$0xff] }
  0x27   :  { %480 = vmatpush.bf16.msra.mxu3 %v855_v7  ;;  %v844_v11 = vld [vmem:[#allocation8 + $0x20] sm:$0xff]  ;;  %v861_v12 = vld [vmem:[#allocation11 + $0x28] sm:$0xff]  ;;  %v835_v14 = vld [vmem:[#allocation7 + $0x18] sm:$0xff] }
  0x28   :  { %234 = vmatpush.bf16.msra.mxu0 %v838_v2  ;;  %v853_v13 = vld [vmem:[#allocation10 + $0x28] sm:$0xff]  ;;  %v843_v15 = vld [vmem:[#allocation8 + $0x18] sm:$0xff]  ;;  %v834_v16 = vld [vmem:[#allocation7 + $0x10] sm:$0xff] }
  0x29   :  { %321 = vmatpush.bf16.msra.mxu1 %v846_v3  ;;  %v842_v17 = vld [vmem:[#allocation8 + $0x10] sm:$0xff]  ;;  %v833_v18 = vld [vmem:[#allocation7 + $0x8] sm:$0xff]  ;;  %v832_v20 = vld [vmem:[#allocation7] sm:$0xff] }
  0x2a   :  { %419 = vmatpush.bf16.msra.mxu2 %v862_v8  ;;  %v841_v19 = vld [vmem:[#allocation8 + $0x8] sm:$0xff]  ;;  %v840_v21 = vld [vmem:[#allocation8] sm:$0xff]  ;;  %v830_v22 = vld [vmem:[#allocation2] sm:$0xff] }
  0x2b   :  { %481 = vmatpush.bf16.msra.mxu3 %v854_v9  ;;  %v831_v23 = vld [vmem:[#allocation5] sm:$0xff]  ;;  %v860_v24 = vld [vmem:[#allocation11 + $0x20] sm:$0xff]  ;;  %v858_v28 = vld [vmem:[#allocation11 + $0x10] sm:$0xff] }
  0x2c   :  { %235 = vmatpush.bf16.msra.mxu0 %v837_v4  ;;  %v852_v25 = vld [vmem:[#allocation10 + $0x20] sm:$0xff]  ;;  %v859_v26 = vld [vmem:[#allocation11 + $0x18] sm:$0xff]  ;;  %v850_v29 = vld [vmem:[#allocation10 + $0x10] sm:$0xff] }
  0x2d   :  { %322 = vmatpush.bf16.msra.mxu1 %v845_v5  ;;  %v851_v27 = vld [vmem:[#allocation10 + $0x18] sm:$0xff]  ;;  %v857_v30 = vld [vmem:[#allocation11 + $0x8] sm:$0xff]  ;;  %v856_v32 = vld [vmem:[#allocation11] sm:$0xff] }
  0x2e   :  { %420 = vmatpush.bf16.msra.mxu2 %v861_v12  ;;  %v849_v31 = vld [vmem:[#allocation10 + $0x8] sm:$0xff]  ;;  %v848_v33 = vld [vmem:[#allocation10] sm:$0xff]  ;;  %v871_v1 = vld [vmem:[#allocation13 + $0x38] sm:$0xff] }
  0x2f   :  { %482 = vmatpush.bf16.msra.mxu3 %v853_v13  ;;  %v886_v36 = vld [vmem:[#allocation14] ss:$0 sm:$0xff]  ;;  %v887_v37 = vld [vmem:[#allocation14 + $0x1] ss:$0 sm:$0xff]  ;;  %v888_v51 = vld [vmem:[#allocation14 + $0x2] ss:$0 sm:$0xff] }
  0x30   :  { %236 = vmatpush.bf16.msra.mxu0 %v836_v10  ;;  %v870_v3 = vld [vmem:[#allocation13 + $0x30] sm:$0xff]  ;;  %v869_v5 = vld [vmem:[#allocation13 + $0x28] sm:$0xff]  ;;  %v868_v7 = vld [vmem:[#allocation13 + $0x20] sm:$0xff] }
  0x31   :  { %323 = vmatpush.bf16.msra.mxu1 %v844_v11  ;;  %v867_v9 = vld [vmem:[#allocation13 + $0x18] sm:$0xff]  ;;  %v866_v13 = vld [vmem:[#allocation13 + $0x10] sm:$0xff] }
  0x32   :  { %421 = vmatpush.bf16.msra.mxu2 %v860_v24 }
  0x33   :  { %483 = vmatpush.bf16.msra.mxu3 %v852_v25 }
  0x34   :  { %237 = vmatpush.bf16.msra.mxu0 %v835_v14 }
  0x35   :  { %324 = vmatpush.bf16.msra.mxu1 %v843_v15 }
  0x36   :  { %422 = vmatpush.bf16.msra.mxu2 %v859_v26 }
  0x37   :  { %484 = vmatpush.bf16.msra.mxu3 %v851_v27 }
  0x38   :  { %238 = vmatpush.bf16.msra.mxu0 %v834_v16 }
  0x39   :  { %325 = vmatpush.bf16.msra.mxu1 %v842_v17  ;;  %v865_v17 = vld [vmem:[#allocation13 + $0x8] sm:$0xff] }
  0x3a   :  { %423 = vmatpush.bf16.msra.mxu2 %v858_v28 }
  0x3b   :  { %485 = vmatpush.bf16.msra.mxu3 %v850_v29 }
  0x3c   :  { %239 = vmatpush.bf16.msra.mxu0 %v833_v18 }
  0x3d   :  { %326 = vmatpush.bf16.msra.mxu1 %v841_v19 }
  0x3e   :  { %424 = vmatpush.bf16.msra.mxu2 %v857_v30 }
  0x3f   :  { %486 = vmatpush.bf16.msra.mxu3 %v849_v31 }
  0x40   :  { %240 = vmatpush.bf16.msra.mxu0 %v832_v20  ;;  %v864_v20 = vld [vmem:[#allocation13] sm:$0xff] }
  0x41   :  { %327 = vmatpush.bf16.msra.mxu1 %v840_v21 }
  0x42   :  { %425 = vmatpush.bf16.msra.mxu2 %v856_v32 }
  0x43   :  { %241 = vmatmul.bf16.vlgmr.msra.gmra.mxu0 %v830_v22  ;;  %487 = vmatpush.bf16.msra.mxu3 %v848_v33 }
  0x44   :  { %328 = vmatmul.bf16.vlgmr.msra.gmra.mxu1 %v831_v23  ;;  %623 = vmatpush.bf16.msrb.mxu0 %v871_v1 }
  0x48   :  { %624 = vmatpush.bf16.msrb.mxu0 %v870_v3 }
  0x4c   :  { %625 = vmatpush.bf16.msrb.mxu0 %v869_v5 }
  0x50   :  { %626 = vmatpush.bf16.msrb.mxu0 %v868_v7 }
  0x54   :  { %627 = vmatpush.bf16.msrb.mxu0 %v867_v9 }
  0x58   :  { %628 = vmatpush.bf16.msrb.mxu0 %v866_v13 }
  0x5c   :  { %629 = vmatpush.bf16.msrb.mxu0 %v865_v17 }
  0x60   :  { %630 = vmatpush.bf16.msrb.mxu0 %v864_v20 }
  0xc0   :  { %v242_v34 = vpop.f32.mrf.mxu0 }
  0xc1   :  { %v329_v35 = vpop.f32.mrf.mxu1  ;;  %v243_v38 = vadd.f32 %v886_v36, %v242_v34 }
  0xc2   :  { %v330_v39 = vadd.f32 %v887_v37, %v329_v35 }
  0xc3   :  { %891 = vtanh.f32 %v243_v38 }
  0xc4   :  { %893 = vtanh.f32 %v330_v39 }
  0xc8   :  { %v244_v40 = vpop.f32.mrf.mxu0 }
  0xc9   :  { %v331_v41 = vpop.f32.mrf.mxu1  ;;  %v245_v42 = vadd.f32 %v886_v36, %v244_v40  ;;  %v892_v44 = vpop.eup %891 }
  0xca   :  { %v332_v43 = vadd.f32 %v887_v37, %v331_v41  ;;  %v894_v45 = vpop.eup %893 }
  0xcb   :  { %895 = vtanh.f32 %v245_v42 }
  0xcc   :  { %897 = vtanh.f32 %v332_v43 }
  0xcd   :  { %899 = vrcp.f32 %v1143_v63 }
  0xd1   :  { %v896_v46 = vpop.eup %895 }
  0xd2   :  { %v898_v47 = vpop.eup %897  ;;  %v336_v48 = vpack.c.bf16 %v896_v46, %v892_v44  ;;  %v889_v44 = vld [vmem:[#allocation14 + $0x3] ss:$0 sm:$0xff] }
  0xd3   :  { %v353_v49 = vpack.c.bf16 %v898_v47, %v894_v45  ;;  %v900_v0 = vpop.eup %899 }
  0xd4   :  { %488 = vmatmul.bf16.vlgmr.msra.gmra.mxu3 %v336_v48  ;;  %v504_v2 = vmul.f32 128.0, %v900_v0  ;;  %vm508_vm0 = vweird.f32 %v900_v0 }
  0xd5   :  { %426 = vmatmul.bf16.vlgmr.msra.gmra.mxu2 %v353_v49 }
  0xd6   :  { %v505_v4 = vsub.f32 1.0, %v504_v2 }
  0xd8   :  { %v506_v6 = vmul.f32 %v900_v0, %v505_v4 }
  0xda   :  { %v507_v8 = vadd.f32 %v900_v0, %v506_v6 }
  0xdc   :  { %v509_v10 = vsel %vm508_vm0, %v900_v0, %v507_v8 }
 0x157   :  { %v489_v50 = vpop.f32.mrf.mxu3 }
 0x158   :  { %v427_v52 = vpop.f32.mrf.mxu2 }
 0x159   :  { %v490_v53 = vadd.f32 %v489_v50, %v427_v52  ;;  %v890_v50 = vld [vmem:[#allocation14 + $0x4] ss:$0 sm:$0xff] }
 0x15b   :  { %v495_v54 = vadd.f32 %v888_v51, %v490_v53 }
 0x15d   :  { %v1237_v55 = vmax.f32 %v495_v54, 0.0 }
 0x15f   :  { %499 = vadd.xlane.f32.xlu0 %v1237_v55  ;;  %v491_v56 = vpop.f32.mrf.mxu3  ;;  %v512_v57 = vmul.f32 %v1237_v55, %v1237_v55 }
 0x160   :  { %v429_v58 = vpop.f32.mrf.mxu2 }
 0x161   :  { %v492_v59 = vadd.f32 %v491_v56, %v429_v58  ;;  %514 = vadd.xlane.f32.xlu1 %v512_v57 }
 0x163   :  { %v496_v60 = vadd.f32 %v888_v51, %v492_v59 }
 0x165   :  { %v1242_v61 = vmax.f32 %v496_v60, 0.0 }
 0x167   :  { %501 = vadd.xlane.f32.xlu0 %v1242_v61  ;;  %v513_v62 = vmul.f32 %v1242_v61, %v1242_v61 }
 0x169   :  { %516 = vadd.xlane.f32.xlu1 %v513_v62 }
 0x1d2   :  { %v500_v11 = vpop.xlane.xlu0 %499 }
 0x1d3   :  { %v510_v12 = vmul.f32 %v509_v10, %v500_v11 }
 0x1d4   :  { %v515_v14 = vpop.xlane.xlu1 %514 }
 0x1d5   :  { %v520_v15 = vmul.f32 %v510_v12, %v510_v12  ;;  %v518_v16 = vmul.f32 %v515_v14, %v509_v10  ;;  %v548_v41 = vsub.f32 %v1237_v55, %v510_v12 }
 0x1d7   :  { %v522_v18 = vsub.f32 %v518_v16, %v520_v15 }
 0x1d9   :  { %v524_v19 = vmax.f32 %v522_v18, 0.0 }
 0x1da   :  { %v502_v21 = vpop.xlane.xlu0 %501 }
 0x1db   :  { %v526_v22 = vadd.f32 1e-12, %v524_v19  ;;  %v511_v23 = vmul.f32 %v509_v10, %v502_v21 }
 0x1dc   :  { %v517_v24 = vpop.xlane.xlu1 %516 }
 0x1dd   :  { %901 = vrsqrt.f32 %v526_v22  ;;  %v521_v25 = vmul.f32 %v511_v23, %v511_v23  ;;  %v519_v26 = vmul.f32 %v517_v24, %v509_v10  ;;  %vm534_vm2 = vweird.f32 %v526_v22 }
 0x1de   :  { %v549_v46 = vsub.f32 %v1242_v61, %v511_v23 }
 0x1df   :  { %v523_v27 = vsub.f32 %v519_v26, %v521_v25 }
 0x1e1   :  { %v525_v28 = vmax.f32 %v523_v27, 0.0 }
 0x1e3   :  { %v902_v29 = vpop.eup %901  ;;  %v527_v31 = vadd.f32 1e-12, %v525_v28 }
 0x1e4   :  { %v529_v30 = vmul.f32 %v902_v29, %v526_v22  ;;  %vm535_vm1 = vweird.f32 %v902_v29 }
 0x1e5   :  { %903 = vrsqrt.f32 %v527_v31  ;;  %vm536_vm3 = vmor %vm534_vm2, %vm535_vm1  ;;  %vm544_vm5 = vweird.f32 %v527_v31 }
 0x1e6   :  { %v530_v32 = vmul.f32 %v902_v29, %v529_v30 }
 0x1e8   :  { %v531_v33 = vmul.f32 0.5, %v530_v32 }
 0x1ea   :  { %v532_v34 = vsub.f32 1.5, %v531_v33 }
 0x1eb   :  { %v904_v35 = vpop.eup %903 }
 0x1ec   :  { %v533_v36 = vmul.f32 %v902_v29, %v532_v34  ;;  %v539_v37 = vmul.f32 %v904_v35, %v527_v31  ;;  %vm545_vm4 = vweird.f32 %v904_v35 }
 0x1ed   :  { %vm546_vm6 = vmor %vm544_vm5, %vm545_vm4 }
 0x1ee   :  { %v540_v38 = vmul.f32 %v904_v35, %v539_v37  ;;  %v537_v40 = vsel %vm536_vm3, %v902_v29, %v533_v36 }
 0x1ef   :  { %v550_v43 = vmul.f32 %v548_v41, %v537_v40 }
 0x1f0   :  { %v541_v39 = vmul.f32 0.5, %v540_v38 }
 0x1f1   :  { %v553_v49 = vmul.f32 %v889_v44, %v550_v43 }
 0x1f2   :  { %v542_v42 = vsub.f32 1.5, %v541_v39 }
 0x1f3   :  { %v556_v52 = vadd.f32 %v890_v50, %v553_v49 }
 0x1f4   :  { %v543_v45 = vmul.f32 %v904_v35, %v542_v42 }
 0x1f6   :  { %v547_v47 = vsel %vm546_vm6, %v904_v35, %v543_v45 }
 0x1f7   :  { %v551_v48 = vmul.f32 %v549_v46, %v547_v47 }
 0x1f9   :  { %v554_v51 = vmul.f32 %v889_v44, %v551_v48 }
 0x1fb   :  { %v557_v53 = vadd.f32 %v890_v50, %v554_v51 }
 0x1fd   :  { %v558_v54 = vpack.c.bf16 %v557_v53, %v556_v52 }
 0x1ff   :  { %631 = vmatmul.bf16.vlgmr.msrb.gmra.mxu0 %v558_v54 }
 0x27c   :  { %v632_v56 = vpop.f32.mrf.mxu0 }
 0x27d   :  { %637 = vst [vmem:[#allocation16] sm:$0xff] %v632_v56 }
 0x284   :  { %v634_v55 = vpop.f32.mrf.mxu0 }
 0x285   :  { %638 = vst [vmem:[#allocation16 + $0x8] sm:$0xff] %v634_v55 }
 0x286   :  { %651 = dma.vmem_to_hbm [thread:$0]  %s644_s13, 256, %s646_s19, [#allocation4], %s1145_s20, %s1145_s20, %s1146_s21  }
 0x287   :  { %1131 = dma.done.wait [#allocation4], 256  }
 0x288   :  { %1132 = vsyncadd [#allocation4], 4294967040 }
 0x289   :  { %656 = vsyncpa [#allocation3], 1 }
 0x28a   :  { %657 = vsyncpa [#allocation6], 1 }
 0x28b   :  { %658 = vsyncpa [#allocation9], 1 }
 0x28c   :  { %659 = vsyncpa [#allocation12], 1 }
 0x28d   :  { %660 = vsyncpa [#allocation15], 1 }
 0x28e   :  { %661 = vsyncpa [#allocation4], 1 }

</bundles_post_ra>
